<compile_context>
chip_gen: v7x
topology: tpu7x:2x2x1
jax: 0.10.0
libtpu: 0.0.40
codegen_flags: <defaults>
</compile_context>

<pallas_src>
import jax
import jax.numpy as jnp
from jax import lax
from jax.experimental import pallas as pl
from jax.experimental.pallas import tpu as pltpu


def lstm_tagger_kernel(emb_ref, wih_ref, whh_ref, b_ref, wout_ref, bout_ref,
                       out_ref, xw_ref, h_all_ref):
    T, B, E = emb_ref.shape          # time-major; B already padded to sublane mult.
    H = whh_ref.shape[0]
    OP = wout_ref.shape[1]           # lane-padded output width (multiple of 128)

    whh = whh_ref[...]               # (H, 4H)  loop-invariant, loaded once
    b = b_ref[...]                   # (1, 4H)  = b_ih + b_hh

    # One big MXU input projection for all timesteps; bias folded in ONCE.
    xw_ref[...] = (jnp.dot(emb_ref[...].reshape(T * B, E), wih_ref[...],
                           preferred_element_type=jnp.float32)
                   + b).reshape(T, B, 4 * H)

    # TODO(synk): hold whh resident in MXU weight registers across the loop via
    # pltpu.matmul_push_rhs / matmul_acc_lhs / matmul_pop (loop-invariant RHS);
    # at production sizes also stream xw / h_all through HBM with a T-chunked
    # pltpu.emit_pipeline instead of keeping them fully VMEM-resident.

    def step(t, carry):
        h, c = carry                 # register-carried; no VMEM round-trip
        # Contiguous leading-axis read of the precomputed projection: (B, 4H).
        gates = xw_ref[t] + jnp.dot(h, whh, preferred_element_type=jnp.float32)
        if 4 * H >= 512:
            # Production H: gate slices are vreg-aligned, so only push the
            # lanes that need each transcendental through the EUP (5H lanes).
            i_g = jax.nn.sigmoid(gates[:, 0 * H:1 * H])
            f_g = jax.nn.sigmoid(gates[:, 1 * H:2 * H])
            g_g = jnp.tanh(gates[:, 2 * H:3 * H])
            o_g = jax.nn.sigmoid(gates[:, 3 * H:4 * H])
        else:
            # 4H == 128: the whole gate tensor is a single vreg — two
            # full-width EUP dispatches, then slice.
            sig = jax.nn.sigmoid(gates)
            tnh = jnp.tanh(gates)
            i_g = sig[:, 0 * H:1 * H]
            f_g = sig[:, 1 * H:2 * H]
            g_g = tnh[:, 2 * H:3 * H]
            o_g = sig[:, 3 * H:4 * H]
        c_new = f_g * c + i_g * g_g
        h_new = o_g * jnp.tanh(c_new)
        h_all_ref[t] = h_new          # off-critical-path stash for epilogue matmul
        return h_new, c_new

    # h0 / c0 are zeros (matches init_hidden()).
    h0 = jnp.zeros((B, H), jnp.float32)
    c0 = jnp.zeros((B, H), jnp.float32)
    # Full unroll for short T (scheduler visibility); partial unroll for long T
    # to bound code size while keeping cross-iteration overlap.
    lax.fori_loop(0, T, step, (h0, c0), unroll=(True if T <= 32 else 8))

    # Single batched output projection: (T*B, H) @ (H, OP) on the MXU.
    tag_space = (jnp.dot(h_all_ref[...].reshape(T * B, H), wout_ref[...],
                         preferred_element_type=jnp.float32)
                 + bout_ref[...]).reshape(T, B, OP)

    # log_softmax over the SEQUENCE axis (torch dim=1 == axis 0 in time-major).
    m = jnp.max(tag_space, axis=0, keepdims=True)
    z = tag_space - m
    lse = jnp.log(jnp.sum(jnp.exp(z), axis=0, keepdims=True))
    out_ref[...] = z - lse           # lane-dense (OP = multiple of 128) store


def lstm_tagger_forward(sentence, params):
    emb_table = params["embedding"]   # (V, E)
    w_ih = params["w_ih"]             # (4H, E) torch layout, gate order (i,f,g,o)
    w_hh = params["w_hh"]             # (4H, H)
    b_ih = params["b_ih"]             # (4H,)
    b_hh = params["b_hh"]             # (4H,)
    w_out = params["w_out"]           # (O, H)
    b_out = params["b_out"]           # (O,)

    B, T = sentence.shape
    E = emb_table.shape[1]
    H = w_hh.shape[1]
    O = w_out.shape[0]

    LANE, SUB = 128, 8
    OP = ((O + LANE - 1) // LANE) * LANE     # lane-dense output width
    BP = ((B + SUB - 1) // SUB) * SUB        # sublane-dense batch

    # Embedding lookup (data-dependent gather) kept as plain-JAX glue.
    # TODO(synk): at production vocab/sequence sizes move this gather (and the
    # output transpose below) into the kernel via PrefetchScalarGridSpec
    # scalar-prefetched token ids; also add a leading "parallel" batch grid
    # axis so v7x's second TensorCore is used. Irrelevant at these toy shapes.
    embeds = jnp.take(emb_table, sentence, axis=0).astype(jnp.float32)   # (B, T, E)
    embeds_tm = jnp.transpose(embeds, (1, 0, 2))                         # (T, B, E)
    if BP != B:
        embeds_tm = jnp.pad(embeds_tm, ((0, 0), (0, BP - B), (0, 0)))

    wih_t = jnp.transpose(w_ih).astype(jnp.float32)            # (E, 4H)
    whh_t = jnp.transpose(w_hh).astype(jnp.float32)            # (H, 4H)
    b = (b_ih + b_hh).reshape(1, 4 * H).astype(jnp.float32)    # (1, 4H)
    wout_p = jnp.zeros((H, OP), jnp.float32).at[:, :O].set(
        jnp.transpose(w_out).astype(jnp.float32))              # (H, OP)
    bout_p = jnp.zeros((1, OP), jnp.float32).at[:, :O].set(
        b_out.reshape(1, O).astype(jnp.float32))               # (1, OP)

    # Scoped-VMEM budget: size from the actual footprint (scratch + inputs +
    # output, with headroom), capped at this generation's physical VMEM.
    f32 = 4
    scratch_bytes = (T * BP * 4 * H + T * BP * H) * f32
    io_bytes = (T * BP * E + E * 4 * H + H * 4 * H + 4 * H
                + H * OP + OP + T * BP * OP) * f32
    vmem_needed = scratch_bytes + 2 * io_bytes + (2 << 20)     # headroom
    try:
        vmem_cap = pltpu.get_tpu_info().vmem_capacity_bytes
    except Exception:
        vmem_cap = 64 << 20                                    # v7x per-TC floor
    vmem_limit = int(min(max(vmem_needed, 8 << 20), vmem_cap))

    vmem = pl.BlockSpec(memory_space=pltpu.MemorySpace.VMEM)
    out_tm = pl.pallas_call(
        lstm_tagger_kernel,
        out_shape=jax.ShapeDtypeStruct((T, BP, OP), jnp.float32),
        in_specs=[vmem] * 6,
        out_specs=vmem,
        scratch_shapes=[
            pltpu.VMEM((T, BP, 4 * H), jnp.float32),   # xw: precomputed projections
            pltpu.VMEM((T, BP, H), jnp.float32),       # per-step hidden states
        ],
        compiler_params=pltpu.CompilerParams(vmem_limit_bytes=vmem_limit),
    )(embeds_tm, wih_t, whh_t, b, wout_p, bout_p)

    # Layout plumbing back to the torch output shape: (B, T, O).
    return jnp.transpose(out_tm, (1, 0, 2))[:B, :, :O]


def reference_forward(sentence, params):
    """Pure-JAX reference matching torch semantics."""
    emb_table = params["embedding"]
    w_ih, w_hh = params["w_ih"], params["w_hh"]
    b_ih, b_hh = params["b_ih"], params["b_hh"]
    w_out, b_out = params["w_out"], params["b_out"]

    B, T = sentence.shape
    H = w_hh.shape[1]
    embeds = jnp.take(emb_table, sentence, axis=0).astype(jnp.float32)

    h = jnp.zeros((B, H), jnp.float32)
    c = jnp.zeros((B, H), jnp.float32)
    outs = []
    for t in range(T):
        x_t = embeds[:, t, :]
        gates = x_t @ w_ih.T + b_ih + h @ w_hh.T + b_hh
        i_g = jax.nn.sigmoid(gates[:, 0 * H:1 * H])
        f_g = jax.nn.sigmoid(gates[:, 1 * H:2 * H])
        g_g = jnp.tanh(gates[:, 2 * H:3 * H])
        o_g = jax.nn.sigmoid(gates[:, 3 * H:4 * H])
        c = f_g * c + i_g * g_g
        h = o_g * jnp.tanh(c)
        outs.append(h)
    lstm_out = jnp.stack(outs, axis=1)                   # (B, T, H)
    tag_space = lstm_out @ w_out.T + b_out               # (B, T, O)
    return jax.nn.log_softmax(tag_space, axis=1)         # dim=1, as in the module


if __name__ == "__main__":
    V, E, H, O = 50, 16, 32, 10
    B, T = 2, 8

    key = jax.random.PRNGKey(0)
    keys = jax.random.split(key, 8)
    s = 1.0 / (H ** 0.5)
    params = {
        "embedding": jax.random.normal(keys[0], (V, E), jnp.float32),
        "w_ih": jax.random.uniform(keys[1], (4 * H, E), jnp.float32, -s, s),
        "w_hh": jax.random.uniform(keys[2], (4 * H, H), jnp.float32, -s, s),
        "b_ih": jax.random.uniform(keys[3], (4 * H,), jnp.float32, -s, s),
        "b_hh": jax.random.uniform(keys[4], (4 * H,), jnp.float32, -s, s),
        "w_out": jax.random.uniform(keys[5], (O, H), jnp.float32, -s, s),
        "b_out": jax.random.uniform(keys[6], (O,), jnp.float32, -s, s),
    }
    sentence = jax.random.randint(keys[7], (B, T), 0, V, jnp.int32)

    out = lstm_tagger_forward(sentence, params)
    out = jax.block_until_ready(out)

    ref = reference_forward(sentence, params)
    assert out.shape == (B, T, O)
    assert jnp.allclose(out, ref, atol=1e-5, rtol=1e-5), "Pallas output != JAX reference"

    print("KERNEL_OK")
</pallas_src>

<mosaic_0001>
module attributes {stable_mosaic.version = 11 : i64} {
  func.func @lstm_tagger_kernel(%arg0: memref<8x8x16xf32, #tpu.memory_space<vmem>>, %arg1: memref<16x128xf32, #tpu.memory_space<vmem>>, %arg2: memref<32x128xf32, #tpu.memory_space<vmem>>, %arg3: memref<1x128xf32, #tpu.memory_space<vmem>>, %arg4: memref<32x128xf32, #tpu.memory_space<vmem>>, %arg5: memref<1x128xf32, #tpu.memory_space<vmem>>, %arg6: memref<8x8x128xf32, #tpu.memory_space<vmem>>, %arg7: memref<8x8x128xf32, #tpu.memory_space<vmem>>, %arg8: memref<8x8x32xf32, #tpu.memory_space<vmem>>) attributes {dimension_semantics = [], scalar_prefetch = 0 : i64, scratch_operands = 2 : i64, tpu.core_type = #tpu.core_type<tc>} {
    %c0 = arith.constant 0 : index
    %c0_0 = arith.constant 0 : index
    %0 = vector.load %arg2[%c0, %c0_0] : memref<32x128xf32, #tpu.memory_space<vmem>>, vector<32x128xf32>
    %c0_1 = arith.constant 0 : index
    %c0_2 = arith.constant 0 : index
    %1 = vector.load %arg3[%c0_1, %c0_2] : memref<1x128xf32, #tpu.memory_space<vmem>>, vector<1x128xf32>
    %c0_3 = arith.constant 0 : index
    %c0_4 = arith.constant 0 : index
    %c0_5 = arith.constant 0 : index
    %2 = vector.load %arg0[%c0_3, %c0_4, %c0_5] : memref<8x8x16xf32, #tpu.memory_space<vmem>>, vector<8x8x16xf32>
    %3 = vector.shape_cast %2 : vector<8x8x16xf32> to vector<64x16xf32>
    %c0_6 = arith.constant 0 : index
    %c0_7 = arith.constant 0 : index
    %4 = vector.load %arg1[%c0_6, %c0_7] : memref<16x128xf32, #tpu.memory_space<vmem>>, vector<16x128xf32>
    %cst = arith.constant dense<0.000000e+00> : vector<64x128xf32>
    %5 = tpu.matmul %3, %4, %cst {dimension_numbers = #tpu.dot_dimension_numbers<[1], [0], [0], [1], [0, 0, 1, 1], [], []>} : vector<64x16xf32>, vector<16x128xf32>, vector<64x128xf32> -> vector<64x128xf32>
    %6 = vector.broadcast %1 : vector<1x128xf32> to vector<64x128xf32>
    %7 = arith.addf %5, %6 : vector<64x128xf32>
    %8 = vector.shape_cast %7 : vector<64x128xf32> to vector<8x8x128xf32>
    %c0_8 = arith.constant 0 : index
    %c0_9 = arith.constant 0 : index
    %c0_10 = arith.constant 0 : index
    %9 = vector.load %arg7[%c0_8, %c0_9, %c0_10] : memref<8x8x128xf32, #tpu.memory_space<vmem>>, vector<8x8x128xf32>
    tpu.vector_store %arg7[%c0_8, %c0_9, %c0_10], %8 {strides = array<i32>} : memref<8x8x128xf32, #tpu.memory_space<vmem>>, vector<8x8x128xf32>,
    %cst_11 = arith.constant 0.000000e+00 : f32
    %10 = vector.broadcast %cst_11 : f32 to vector<8x32xf32>
    %cst_12 = arith.constant 0.000000e+00 : f32
    %11 = vector.broadcast %cst_12 : f32 to vector<8x32xf32>
    %c0_i32 = arith.constant 0 : i32
    %12 = arith.index_cast %c0_i32 : i32 to index
    %c0_13 = arith.constant 0 : index
    %c0_14 = arith.constant 0 : index
    %13 = vector.load %arg7[%12, %c0_13, %c0_14] : memref<8x8x128xf32, #tpu.memory_space<vmem>>, vector<1x8x128xf32>
    %14 = vector.shape_cast %13 : vector<1x8x128xf32> to vector<8x128xf32>
    %cst_15 = arith.constant dense<0.000000e+00> : vector<8x128xf32>
    %15 = tpu.matmul %10, %0, %cst_15 {dimension_numbers = #tpu.dot_dimension_numbers<[1], [0], [0], [1], [0, 0, 1, 1], [], []>} : vector<8x32xf32>, vector<32x128xf32>, vector<8x128xf32> -> vector<8x128xf32>
    %16 = arith.addf %14, %15 : vector<8x128xf32>
    %17 = arith.negf %16 : vector<8x128xf32>
    %18 = math.exp %17 : vector<8x128xf32>
    %cst_16 = arith.constant 1.000000e+00 : f32
    %19 = vector.broadcast %cst_16 : f32 to vector<8x128xf32>
    %20 = arith.addf %19, %18 : vector<8x128xf32>
    %21 = arith.divf %19, %20 : vector<8x128xf32>
    %22 = math.tanh %16 : vector<8x128xf32>
    %23 = vector.extract_strided_slice %21 {offsets = [0, 0], sizes = [8, 32], strides = [1, 1]} : vector<8x128xf32> to vector<8x32xf32>
    %24 = vector.extract_strided_slice %21 {offsets = [0, 32], sizes = [8, 32], strides = [1, 1]} : vector<8x128xf32> to vector<8x32xf32>
    %25 = vector.extract_strided_slice %22 {offsets = [0, 64], sizes = [8, 32], strides = [1, 1]} : vector<8x128xf32> to vector<8x32xf32>
    %26 = vector.extract_strided_slice %21 {offsets = [0, 96], sizes = [8, 32], strides = [1, 1]} : vector<8x128xf32> to vector<8x32xf32>
    %27 = arith.mulf %24, %11 : vector<8x32xf32>
    %28 = arith.mulf %23, %25 : vector<8x32xf32>
    %29 = arith.addf %27, %28 : vector<8x32xf32>
    %30 = math.tanh %29 : vector<8x32xf32>
    %31 = arith.mulf %26, %30 : vector<8x32xf32>
    %32 = arith.index_cast %c0_i32 : i32 to index
    %c0_17 = arith.constant 0 : index
    %c0_18 = arith.constant 0 : index
    %33 = vector.load %arg8[%32, %c0_17, %c0_18] : memref<8x8x32xf32, #tpu.memory_space<vmem>>, vector<1x8x32xf32>
    %34 = vector.shape_cast %33 : vector<1x8x32xf32> to vector<8x32xf32>
    %35 = vector.shape_cast %31 : vector<8x32xf32> to vector<1x8x32xf32>
    tpu.vector_store %arg8[%32, %c0_17, %c0_18], %35 {strides = array<i32>} : memref<8x8x32xf32, #tpu.memory_space<vmem>>, vector<1x8x32xf32>,
    %c1_i32 = arith.constant 1 : i32
    %36 = arith.index_cast %c1_i32 : i32 to index
    %c0_19 = arith.constant 0 : index
    %c0_20 = arith.constant 0 : index
    %37 = vector.load %arg7[%36, %c0_19, %c0_20] : memref<8x8x128xf32, #tpu.memory_space<vmem>>, vector<1x8x128xf32>
    %38 = vector.shape_cast %37 : vector<1x8x128xf32> to vector<8x128xf32>
    %cst_21 = arith.constant dense<0.000000e+00> : vector<8x128xf32>
    %39 = tpu.matmul %31, %0, %cst_21 {dimension_numbers = #tpu.dot_dimension_numbers<[1], [0], [0], [1], [0, 0, 1, 1], [], []>} : vector<8x32xf32>, vector<32x128xf32>, vector<8x128xf32> -> vector<8x128xf32>
    %40 = arith.addf %38, %39 : vector<8x128xf32>
    %41 = arith.negf %40 : vector<8x128xf32>
    %42 = math.exp %41 : vector<8x128xf32>
    %cst_22 = arith.constant 1.000000e+00 : f32
    %43 = vector.broadcast %cst_22 : f32 to vector<8x128xf32>
    %44 = arith.addf %43, %42 : vector<8x128xf32>
    %45 = arith.divf %43, %44 : vector<8x128xf32>
    %46 = math.tanh %40 : vector<8x128xf32>
    %47 = vector.extract_strided_slice %45 {offsets = [0, 0], sizes = [8, 32], strides = [1, 1]} : vector<8x128xf32> to vector<8x32xf32>
    %48 = vector.extract_strided_slice %45 {offsets = [0, 32], sizes = [8, 32], strides = [1, 1]} : vector<8x128xf32> to vector<8x32xf32>
    %49 = vector.extract_strided_slice %46 {offsets = [0, 64], sizes = [8, 32], strides = [1, 1]} : vector<8x128xf32> to vector<8x32xf32>
    %50 = vector.extract_strided_slice %45 {offsets = [0, 96], sizes = [8, 32], strides = [1, 1]} : vector<8x128xf32> to vector<8x32xf32>
    %51 = arith.mulf %48, %29 : vector<8x32xf32>
    %52 = arith.mulf %47, %49 : vector<8x32xf32>
    %53 = arith.addf %51, %52 : vector<8x32xf32>
    %54 = math.tanh %53 : vector<8x32xf32>
    %55 = arith.mulf %50, %54 : vector<8x32xf32>
    %56 = arith.index_cast %c1_i32 : i32 to index
    %c0_23 = arith.constant 0 : index
    %c0_24 = arith.constant 0 : index
    %57 = vector.load %arg8[%56, %c0_23, %c0_24] : memref<8x8x32xf32, #tpu.memory_space<vmem>>, vector<1x8x32xf32>
    %58 = vector.shape_cast %57 : vector<1x8x32xf32> to vector<8x32xf32>
    %59 = vector.shape_cast %55 : vector<8x32xf32> to vector<1x8x32xf32>
    tpu.vector_store %arg8[%56, %c0_23, %c0_24], %59 {strides = array<i32>} : memref<8x8x32xf32, #tpu.memory_space<vmem>>, vector<1x8x32xf32>,
    %c2_i32 = arith.constant 2 : i32
    %60 = arith.index_cast %c2_i32 : i32 to index
    %c0_25 = arith.constant 0 : index
    %c0_26 = arith.constant 0 : index
    %61 = vector.load %arg7[%60, %c0_25, %c0_26] : memref<8x8x128xf32, #tpu.memory_space<vmem>>, vector<1x8x128xf32>
    %62 = vector.shape_cast %61 : vector<1x8x128xf32> to vector<8x128xf32>
    %cst_27 = arith.constant dense<0.000000e+00> : vector<8x128xf32>
    %63 = tpu.matmul %55, %0, %cst_27 {dimension_numbers = #tpu.dot_dimension_numbers<[1], [0], [0], [1], [0, 0, 1, 1], [], []>} : vector<8x32xf32>, vector<32x128xf32>, vector<8x128xf32> -> vector<8x128xf32>
    %64 = arith.addf %62, %63 : vector<8x128xf32>
    %65 = arith.negf %64 : vector<8x128xf32>
    %66 = math.exp %65 : vector<8x128xf32>
    %cst_28 = arith.constant 1.000000e+00 : f32
    %67 = vector.broadcast %cst_28 : f32 to vector<8x128xf32>
    %68 = arith.addf %67, %66 : vector<8x128xf32>
    %69 = arith.divf %67, %68 : vector<8x128xf32>
    %70 = math.tanh %64 : vector<8x128xf32>
    %71 = vector.extract_strided_slice %69 {offsets = [0, 0], sizes = [8, 32], strides = [1, 1]} : vector<8x128xf32> to vector<8x32xf32>
    %72 = vector.extract_strided_slice %69 {offsets = [0, 32], sizes = [8, 32], strides = [1, 1]} : vector<8x128xf32> to vector<8x32xf32>
    %73 = vector.extract_strided_slice %70 {offsets = [0, 64], sizes = [8, 32], strides = [1, 1]} : vector<8x128xf32> to vector<8x32xf32>
    %74 = vector.extract_strided_slice %69 {offsets = [0, 96], sizes = [8, 32], strides = [1, 1]} : vector<8x128xf32> to vector<8x32xf32>
    %75 = arith.mulf %72, %53 : vector<8x32xf32>
    %76 = arith.mulf %71, %73 : vector<8x32xf32>
    %77 = arith.addf %75, %76 : vector<8x32xf32>
    %78 = math.tanh %77 : vector<8x32xf32>
    %79 = arith.mulf %74, %78 : vector<8x32xf32>
    %80 = arith.index_cast %c2_i32 : i32 to index
    %c0_29 = arith.constant 0 : index
    %c0_30 = arith.constant 0 : index
    %81 = vector.load %arg8[%80, %c0_29, %c0_30] : memref<8x8x32xf32, #tpu.memory_space<vmem>>, vector<1x8x32xf32>
    %82 = vector.shape_cast %81 : vector<1x8x32xf32> to vector<8x32xf32>
    %83 = vector.shape_cast %79 : vector<8x32xf32> to vector<1x8x32xf32>
    tpu.vector_store %arg8[%80, %c0_29, %c0_30], %83 {strides = array<i32>} : memref<8x8x32xf32, #tpu.memory_space<vmem>>, vector<1x8x32xf32>,
    %c3_i32 = arith.constant 3 : i32
    %84 = arith.index_cast %c3_i32 : i32 to index
    %c0_31 = arith.constant 0 : index
    %c0_32 = arith.constant 0 : index
    %85 = vector.load %arg7[%84, %c0_31, %c0_32] : memref<8x8x128xf32, #tpu.memory_space<vmem>>, vector<1x8x128xf32>
    %86 = vector.shape_cast %85 : vector<1x8x128xf32> to vector<8x128xf32>
    %cst_33 = arith.constant dense<0.000000e+00> : vector<8x128xf32>
    %87 = tpu.matmul %79, %0, %cst_33 {dimension_numbers = #tpu.dot_dimension_numbers<[1], [0], [0], [1], [0, 0, 1, 1], [], []>} : vector<8x32xf32>, vector<32x128xf32>, vector<8x128xf32> -> vector<8x128xf32>
    %88 = arith.addf %86, %87 : vector<8x128xf32>
    %89 = arith.negf %88 : vector<8x128xf32>
    %90 = math.exp %89 : vector<8x128xf32>
    %cst_34 = arith.constant 1.000000e+00 : f32
    %91 = vector.broadcast %cst_34 : f32 to vector<8x128xf32>
    %92 = arith.addf %91, %90 : vector<8x128xf32>
    %93 = arith.divf %91, %92 : vector<8x128xf32>
    %94 = math.tanh %88 : vector<8x128xf32>
    %95 = vector.extract_strided_slice %93 {offsets = [0, 0], sizes = [8, 32], strides = [1, 1]} : vector<8x128xf32> to vector<8x32xf32>
    %96 = vector.extract_strided_slice %93 {offsets = [0, 32], sizes = [8, 32], strides = [1, 1]} : vector<8x128xf32> to vector<8x32xf32>
    %97 = vector.extract_strided_slice %94 {offsets = [0, 64], sizes = [8, 32], strides = [1, 1]} : vector<8x128xf32> to vector<8x32xf32>
    %98 = vector.extract_strided_slice %93 {offsets = [0, 96], sizes = [8, 32], strides = [1, 1]} : vector<8x128xf32> to vector<8x32xf32>
    %99 = arith.mulf %96, %77 : vector<8x32xf32>
    %100 = arith.mulf %95, %97 : vector<8x32xf32>
    %101 = arith.addf %99, %100 : vector<8x32xf32>
    %102 = math.tanh %101 : vector<8x32xf32>
    %103 = arith.mulf %98, %102 : vector<8x32xf32>
    %104 = arith.index_cast %c3_i32 : i32 to index
    %c0_35 = arith.constant 0 : index
    %c0_36 = arith.constant 0 : index
    %105 = vector.load %arg8[%104, %c0_35, %c0_36] : memref<8x8x32xf32, #tpu.memory_space<vmem>>, vector<1x8x32xf32>
    %106 = vector.shape_cast %105 : vector<1x8x32xf32> to vector<8x32xf32>
    %107 = vector.shape_cast %103 : vector<8x32xf32> to vector<1x8x32xf32>
    tpu.vector_store %arg8[%104, %c0_35, %c0_36], %107 {strides = array<i32>} : memref<8x8x32xf32, #tpu.memory_space<vmem>>, vector<1x8x32xf32>,
    %c4_i32 = arith.constant 4 : i32
    %108 = arith.index_cast %c4_i32 : i32 to index
    %c0_37 = arith.constant 0 : index
    %c0_38 = arith.constant 0 : index
    %109 = vector.load %arg7[%108, %c0_37, %c0_38] : memref<8x8x128xf32, #tpu.memory_space<vmem>>, vector<1x8x128xf32>
    %110 = vector.shape_cast %109 : vector<1x8x128xf32> to vector<8x128xf32>
    %cst_39 = arith.constant dense<0.000000e+00> : vector<8x128xf32>
    %111 = tpu.matmul %103, %0, %cst_39 {dimension_numbers = #tpu.dot_dimension_numbers<[1], [0], [0], [1], [0, 0, 1, 1], [], []>} : vector<8x32xf32>, vector<32x128xf32>, vector<8x128xf32> -> vector<8x128xf32>
    %112 = arith.addf %110, %111 : vector<8x128xf32>
    %113 = arith.negf %112 : vector<8x128xf32>
    %114 = math.exp %113 : vector<8x128xf32>
    %cst_40 = arith.constant 1.000000e+00 : f32
    %115 = vector.broadcast %cst_40 : f32 to vector<8x128xf32>
    %116 = arith.addf %115, %114 : vector<8x128xf32>
    %117 = arith.divf %115, %116 : vector<8x128xf32>
    %118 = math.tanh %112 : vector<8x128xf32>
    %119 = vector.extract_strided_slice %117 {offsets = [0, 0], sizes = [8, 32], strides = [1, 1]} : vector<8x128xf32> to vector<8x32xf32>
    %120 = vector.extract_strided_slice %117 {offsets = [0, 32], sizes = [8, 32], strides = [1, 1]} : vector<8x128xf32> to vector<8x32xf32>
    %121 = vector.extract_strided_slice %118 {offsets = [0, 64], sizes = [8, 32], strides = [1, 1]} : vector<8x128xf32> to vector<8x32xf32>
    %122 = vector.extract_strided_slice %117 {offsets = [0, 96], sizes = [8, 32], strides = [1, 1]} : vector<8x128xf32> to vector<8x32xf32>
    %123 = arith.mulf %120, %101 : vector<8x32xf32>
    %124 = arith.mulf %119, %121 : vector<8x32xf32>
    %125 = arith.addf %123, %124 : vector<8x32xf32>
    %126 = math.tanh %125 : vector<8x32xf32>
    %127 = arith.mulf %122, %126 : vector<8x32xf32>
    %128 = arith.index_cast %c4_i32 : i32 to index
    %c0_41 = arith.constant 0 : index
    %c0_42 = arith.constant 0 : index
    %129 = vector.load %arg8[%128, %c0_41, %c0_42] : memref<8x8x32xf32, #tpu.memory_space<vmem>>, vector<1x8x32xf32>
    %130 = vector.shape_cast %129 : vector<1x8x32xf32> to vector<8x32xf32>
    %131 = vector.shape_cast %127 : vector<8x32xf32> to vector<1x8x32xf32>
    tpu.vector_store %arg8[%128, %c0_41, %c0_42], %131 {strides = array<i32>} : memref<8x8x32xf32, #tpu.memory_space<vmem>>, vector<1x8x32xf32>,
    %c5_i32 = arith.constant 5 : i32
    %132 = arith.index_cast %c5_i32 : i32 to index
    %c0_43 = arith.constant 0 : index
    %c0_44 = arith.constant 0 : index
    %133 = vector.load %arg7[%132, %c0_43, %c0_44] : memref<8x8x128xf32, #tpu.memory_space<vmem>>, vector<1x8x128xf32>
    %134 = vector.shape_cast %133 : vector<1x8x128xf32> to vector<8x128xf32>
    %cst_45 = arith.constant dense<0.000000e+00> : vector<8x128xf32>
    %135 = tpu.matmul %127, %0, %cst_45 {dimension_numbers = #tpu.dot_dimension_numbers<[1], [0], [0], [1], [0, 0, 1, 1], [], []>} : vector<8x32xf32>, vector<32x128xf32>, vector<8x128xf32> -> vector<8x128xf32>
    %136 = arith.addf %134, %135 : vector<8x128xf32>
    %137 = arith.negf %136 : vector<8x128xf32>
    %138 = math.exp %137 : vector<8x128xf32>
    %cst_46 = arith.constant 1.000000e+00 : f32
    %139 = vector.broadcast %cst_46 : f32 to vector<8x128xf32>
    %140 = arith.addf %139, %138 : vector<8x128xf32>
    %141 = arith.divf %139, %140 : vector<8x128xf32>
    %142 = math.tanh %136 : vector<8x128xf32>
    %143 = vector.extract_strided_slice %141 {offsets = [0, 0], sizes = [8, 32], strides = [1, 1]} : vector<8x128xf32> to vector<8x32xf32>
    %144 = vector.extract_strided_slice %141 {offsets = [0, 32], sizes = [8, 32], strides = [1, 1]} : vector<8x128xf32> to vector<8x32xf32>
    %145 = vector.extract_strided_slice %142 {offsets = [0, 64], sizes = [8, 32], strides = [1, 1]} : vector<8x128xf32> to vector<8x32xf32>
    %146 = vector.extract_strided_slice %141 {offsets = [0, 96], sizes = [8, 32], strides = [1, 1]} : vector<8x128xf32> to vector<8x32xf32>
    %147 = arith.mulf %144, %125 : vector<8x32xf32>
    %148 = arith.mulf %143, %145 : vector<8x32xf32>
    %149 = arith.addf %147, %148 : vector<8x32xf32>
    %150 = math.tanh %149 : vector<8x32xf32>
    %151 = arith.mulf %146, %150 : vector<8x32xf32>
    %152 = arith.index_cast %c5_i32 : i32 to index
    %c0_47 = arith.constant 0 : index
    %c0_48 = arith.constant 0 : index
    %153 = vector.load %arg8[%152, %c0_47, %c0_48] : memref<8x8x32xf32, #tpu.memory_space<vmem>>, vector<1x8x32xf32>
    %154 = vector.shape_cast %153 : vector<1x8x32xf32> to vector<8x32xf32>
    %155 = vector.shape_cast %151 : vector<8x32xf32> to vector<1x8x32xf32>
    tpu.vector_store %arg8[%152, %c0_47, %c0_48], %155 {strides = array<i32>} : memref<8x8x32xf32, #tpu.memory_space<vmem>>, vector<1x8x32xf32>,
    %c6_i32 = arith.constant 6 : i32
    %156 = arith.index_cast %c6_i32 : i32 to index
    %c0_49 = arith.constant 0 : index
    %c0_50 = arith.constant 0 : index
    %157 = vector.load %arg7[%156, %c0_49, %c0_50] : memref<8x8x128xf32, #tpu.memory_space<vmem>>, vector<1x8x128xf32>
    %158 = vector.shape_cast %157 : vector<1x8x128xf32> to vector<8x128xf32>
    %cst_51 = arith.constant dense<0.000000e+00> : vector<8x128xf32>
    %159 = tpu.matmul %151, %0, %cst_51 {dimension_numbers = #tpu.dot_dimension_numbers<[1], [0], [0], [1], [0, 0, 1, 1], [], []>} : vector<8x32xf32>, vector<32x128xf32>, vector<8x128xf32> -> vector<8x128xf32>
    %160 = arith.addf %158, %159 : vector<8x128xf32>
    %161 = arith.negf %160 : vector<8x128xf32>
    %162 = math.exp %161 : vector<8x128xf32>
    %cst_52 = arith.constant 1.000000e+00 : f32
    %163 = vector.broadcast %cst_52 : f32 to vector<8x128xf32>
    %164 = arith.addf %163, %162 : vector<8x128xf32>
    %165 = arith.divf %163, %164 : vector<8x128xf32>
    %166 = math.tanh %160 : vector<8x128xf32>
    %167 = vector.extract_strided_slice %165 {offsets = [0, 0], sizes = [8, 32], strides = [1, 1]} : vector<8x128xf32> to vector<8x32xf32>
    %168 = vector.extract_strided_slice %165 {offsets = [0, 32], sizes = [8, 32], strides = [1, 1]} : vector<8x128xf32> to vector<8x32xf32>
    %169 = vector.extract_strided_slice %166 {offsets = [0, 64], sizes = [8, 32], strides = [1, 1]} : vector<8x128xf32> to vector<8x32xf32>
    %170 = vector.extract_strided_slice %165 {offsets = [0, 96], sizes = [8, 32], strides = [1, 1]} : vector<8x128xf32> to vector<8x32xf32>
    %171 = arith.mulf %168, %149 : vector<8x32xf32>
    %172 = arith.mulf %167, %169 : vector<8x32xf32>
    %173 = arith.addf %171, %172 : vector<8x32xf32>
    %174 = math.tanh %173 : vector<8x32xf32>
    %175 = arith.mulf %170, %174 : vector<8x32xf32>
    %176 = arith.index_cast %c6_i32 : i32 to index
    %c0_53 = arith.constant 0 : index
    %c0_54 = arith.constant 0 : index
    %177 = vector.load %arg8[%176, %c0_53, %c0_54] : memref<8x8x32xf32, #tpu.memory_space<vmem>>, vector<1x8x32xf32>
    %178 = vector.shape_cast %177 : vector<1x8x32xf32> to vector<8x32xf32>
    %179 = vector.shape_cast %175 : vector<8x32xf32> to vector<1x8x32xf32>
    tpu.vector_store %arg8[%176, %c0_53, %c0_54], %179 {strides = array<i32>} : memref<8x8x32xf32, #tpu.memory_space<vmem>>, vector<1x8x32xf32>,
    %c7_i32 = arith.constant 7 : i32
    %180 = arith.index_cast %c7_i32 : i32 to index
    %c0_55 = arith.constant 0 : index
    %c0_56 = arith.constant 0 : index
    %181 = vector.load %arg7[%180, %c0_55, %c0_56] : memref<8x8x128xf32, #tpu.memory_space<vmem>>, vector<1x8x128xf32>
    %182 = vector.shape_cast %181 : vector<1x8x128xf32> to vector<8x128xf32>
    %cst_57 = arith.constant dense<0.000000e+00> : vector<8x128xf32>
    %183 = tpu.matmul %175, %0, %cst_57 {dimension_numbers = #tpu.dot_dimension_numbers<[1], [0], [0], [1], [0, 0, 1, 1], [], []>} : vector<8x32xf32>, vector<32x128xf32>, vector<8x128xf32> -> vector<8x128xf32>
    %184 = arith.addf %182, %183 : vector<8x128xf32>
    %185 = arith.negf %184 : vector<8x128xf32>
    %186 = math.exp %185 : vector<8x128xf32>
    %cst_58 = arith.constant 1.000000e+00 : f32
    %187 = vector.broadcast %cst_58 : f32 to vector<8x128xf32>
    %188 = arith.addf %187, %186 : vector<8x128xf32>
    %189 = arith.divf %187, %188 : vector<8x128xf32>
    %190 = math.tanh %184 : vector<8x128xf32>
    %191 = vector.extract_strided_slice %189 {offsets = [0, 0], sizes = [8, 32], strides = [1, 1]} : vector<8x128xf32> to vector<8x32xf32>
    %192 = vector.extract_strided_slice %189 {offsets = [0, 32], sizes = [8, 32], strides = [1, 1]} : vector<8x128xf32> to vector<8x32xf32>
    %193 = vector.extract_strided_slice %190 {offsets = [0, 64], sizes = [8, 32], strides = [1, 1]} : vector<8x128xf32> to vector<8x32xf32>
    %194 = vector.extract_strided_slice %189 {offsets = [0, 96], sizes = [8, 32], strides = [1, 1]} : vector<8x128xf32> to vector<8x32xf32>
    %195 = arith.mulf %192, %173 : vector<8x32xf32>
    %196 = arith.mulf %191, %193 : vector<8x32xf32>
    %197 = arith.addf %195, %196 : vector<8x32xf32>
    %198 = math.tanh %197 : vector<8x32xf32>
    %199 = arith.mulf %194, %198 : vector<8x32xf32>
    %200 = arith.index_cast %c7_i32 : i32 to index
    %c0_59 = arith.constant 0 : index
    %c0_60 = arith.constant 0 : index
    %201 = vector.load %arg8[%200, %c0_59, %c0_60] : memref<8x8x32xf32, #tpu.memory_space<vmem>>, vector<1x8x32xf32>
    %202 = vector.shape_cast %201 : vector<1x8x32xf32> to vector<8x32xf32>
    %203 = vector.shape_cast %199 : vector<8x32xf32> to vector<1x8x32xf32>
    tpu.vector_store %arg8[%200, %c0_59, %c0_60], %203 {strides = array<i32>} : memref<8x8x32xf32, #tpu.memory_space<vmem>>, vector<1x8x32xf32>,
    %c8_i32 = arith.constant 8 : i32
    %c0_61 = arith.constant 0 : index
    %c0_62 = arith.constant 0 : index
    %c0_63 = arith.constant 0 : index
    %204 = vector.load %arg8[%c0_61, %c0_62, %c0_63] : memref<8x8x32xf32, #tpu.memory_space<vmem>>, vector<8x8x32xf32>
    %205 = vector.shape_cast %204 : vector<8x8x32xf32> to vector<64x32xf32>
    %c0_64 = arith.constant 0 : index
    %c0_65 = arith.constant 0 : index
    %206 = vector.load %arg4[%c0_64, %c0_65] : memref<32x128xf32, #tpu.memory_space<vmem>>, vector<32x128xf32>
    %cst_66 = arith.constant dense<0.000000e+00> : vector<64x128xf32>
    %207 = tpu.matmul %205, %206, %cst_66 {dimension_numbers = #tpu.dot_dimension_numbers<[1], [0], [0], [1], [0, 0, 1, 1], [], []>} : vector<64x32xf32>, vector<32x128xf32>, vector<64x128xf32> -> vector<64x128xf32>
    %c0_67 = arith.constant 0 : index
    %c0_68 = arith.constant 0 : index
    %208 = vector.load %arg5[%c0_67, %c0_68] : memref<1x128xf32, #tpu.memory_space<vmem>>, vector<1x128xf32>
    %209 = vector.broadcast %208 : vector<1x128xf32> to vector<64x128xf32>
    %210 = arith.addf %207, %209 : vector<64x128xf32>
    %211 = vector.shape_cast %210 : vector<64x128xf32> to vector<8x8x128xf32>
    %cst_69 = arith.constant dense<0xFF800000> : vector<8x128xf32>
    %212 = vector.multi_reduction <maximumf>, %211, %cst_69 [0] : vector<8x8x128xf32> to vector<8x128xf32>
    %213 = vector.shape_cast %212 : vector<8x128xf32> to vector<1x8x128xf32>
    %214 = vector.broadcast %213 : vector<1x8x128xf32> to vector<8x8x128xf32>
    %215 = arith.subf %211, %214 : vector<8x8x128xf32>
    %216 = math.exp %215 : vector<8x8x128xf32>
    %cst_70 = arith.constant dense<0.000000e+00> : vector<8x128xf32>
    %217 = vector.multi_reduction <add>, %216, %cst_70 [0] : vector<8x8x128xf32> to vector<8x128xf32>
    %218 = vector.shape_cast %217 : vector<8x128xf32> to vector<1x8x128xf32>
    %219 = math.log %218 : vector<1x8x128xf32>
    %220 = vector.broadcast %219 : vector<1x8x128xf32> to vector<8x8x128xf32>
    %221 = arith.subf %215, %220 : vector<8x8x128xf32>
    %c0_71 = arith.constant 0 : index
    %c0_72 = arith.constant 0 : index
    %c0_73 = arith.constant 0 : index
    %222 = vector.load %arg6[%c0_71, %c0_72, %c0_73] : memref<8x8x128xf32, #tpu.memory_space<vmem>>, vector<8x8x128xf32>
    tpu.vector_store %arg6[%c0_71, %c0_72, %c0_73], %221 {strides = array<i32>} : memref<8x8x128xf32, #tpu.memory_space<vmem>>, vector<8x8x128xf32>,
    return
  }
}

</mosaic_0001>

<bundles_post_ra>
// kernel: tpu_custom_call.1
= control target key start
LH: loop header
LB: loop body
LE: loop exit
PB: predicated region body
PF: predicated region fallthrough
CT: control target
= control target key end

     0   :  { %11 = vsyncpa [#allocation5], 0  ;;  %s2106_s0 = inlined_call_operand.hbm [shape: f32[8,8,16], index: 0, kind: input, shape index: {}]   ;;  %s2107_s1 = inlined_call_operand.hbm [shape: f32[16,128], index: 1, kind: input, shape index: {}]   ;;  %s2108_s2 = inlined_call_operand.hbm [shape: f32[32,128], index: 2, kind: input, shape index: {}]   ;;  %s2109_s3 = inlined_call_operand.vmem [shape: f32[1,128], index: 3, kind: input, shape index: {}]   ;;  %s2110_s4 = inlined_call_operand.hbm [shape: f32[32,128], index: 4, kind: input, shape index: {}]   ;;  %s2111_s5 = inlined_call_operand.vmem [shape: f32[1,128], index: 5, kind: input, shape index: {}]   ;;  %s2112_s6 = inlined_call_operand.hbm [shape: f32[8,8,128], index: 6, kind: output, shape index: {}]  }
   0x1   :  { %12 = vsyncpa [#allocation8], 0 }
   0x2   :  { %13 = vsyncpa [#allocation11], 0 }
   0x3   :  { %14 = vsyncpa [#allocation6], 0  ;;  %s1794_s21 = smov [#allocation7]   ;;  %s1795_s23 = smov [#allocation4]  }
   0x4   :  { %s32_s22 = sshll.u32 %s1794_s21, 4  ;;  %s20_s24 = sshll.u32 %s1795_s23, 4  ;;  %s33_s22 = int_to_ptr.vmem [resolvable:$true] %s32_s22  ;;  %s1841_s24 = int_to_ptr.vmem [resolvable:$true] %s20_s24 }
   0x5   :  { %s1676_s27 = scalar_lea.hbm %s2107_s1, 256 }
   0x6   :  { %p1677_p0 = scmp.ne.s32.totalorder %s2107_s1, %s1676_s27  ;;  %p1680_p1 = scmp.lt.u32.totalorder %s1676_s27, %s2107_s1 }
   0x8   :  { %p1682_p2 = pnand %p1680_p1, %p1677_p0 }
   0xa   :  { %1685 = shalt.err (!%p1682_p2)
}
   0xb   :  { %s1686_s8 = scalar_lea.vmem %s33_s22, 256  ;;  %p1691_p4 = scmp.lt.s32.totalorder %s33_s22, %s33_s22 }
   0xc   :  { %p1687_p3 = scmp.ne.s32.totalorder %s33_s22, %s1686_s8  ;;  %p1692_p5 = scmp.lt.s32.totalorder %s1686_s8, %s1686_s8 }
   0xe   :  { %p1693_p6 = por %p1692_p5, %p1691_p4 }
  0x10   :  { %p1694_p7 = pnand %p1693_p6, %p1687_p3 }
  0x12   :  { %1697 = shalt.err (!%p1694_p7)
}
  0x13   :  { %s1796_s9 = smov 128   ;;  %s1797_s10 = smov 8  }
  0x14   :  { %38 = dma.hbm_to_vmem [thread:$0]  %s2107_s1, 256, %s33_s22, [#allocation8], %s1796_s9, %s1796_s9, %s1797_s10  }
  0x15   :  { %s1698_s15 = scalar_lea.hbm %s2106_s0, 1024 }
  0x16   :  { %p1699_p8 = scmp.ne.s32.totalorder %s2106_s0, %s1698_s15  ;;  %p1702_p9 = scmp.lt.u32.totalorder %s1698_s15, %s2106_s0 }
  0x18   :  { %p1704_p10 = pnand %p1702_p9, %p1699_p8 }
  0x1a   :  { %1707 = shalt.err (!%p1704_p10)
}
  0x1b   :  { %s1708_s20 = scalar_lea.vmem %s1841_s24, 1024  ;;  %p1713_p12 = scmp.lt.s32.totalorder %s1841_s24, %s1841_s24 }
  0x1c   :  { %p1709_p11 = scmp.ne.s32.totalorder %s1841_s24, %s1708_s20  ;;  %p1714_p13 = scmp.lt.s32.totalorder %s1708_s20, %s1708_s20 }
  0x1e   :  { %p1715_p0 = por %p1714_p13, %p1713_p12 }
  0x20   :  { %p1716_p1 = pnand %p1715_p0, %p1709_p11 }
  0x22   :  { %1719 = shalt.err (!%p1716_p1)
}
  0x23   :  { %26 = dma.hbm_to_vmem [thread:$0]  %s2106_s0, 1024, %s1841_s24, [#allocation5], %s1796_s9, %s1796_s9, %s1797_s10  }
  0x24   :  { %s1798_s22 = smov [#allocation9]   ;;  %s1799_s25 = smov [#allocation10]  }
  0x25   :  { %s44_s23 = sshll.u32 %s1798_s22, 4  ;;  %s58_s26 = sshll.u32 %s1799_s25, 4  ;;  %s45_s23 = int_to_ptr.vmem [resolvable:$true] %s44_s23  ;;  %s1878_s26 = int_to_ptr.vmem [resolvable:$true] %s58_s26 }
  0x26   :  { %s1720_s29 = scalar_lea.hbm %s2108_s2, 512 }
  0x27   :  { %p1721_p2 = scmp.ne.s32.totalorder %s2108_s2, %s1720_s29  ;;  %p1724_p3 = scmp.lt.u32.totalorder %s1720_s29, %s2108_s2 }
  0x29   :  { %p1726_p4 = pnand %p1724_p3, %p1721_p2 }
  0x2b   :  { %1729 = shalt.err (!%p1726_p4)
}
  0x2c   :  { %s1730_s0 = scalar_lea.vmem %s45_s23, 512  ;;  %p1735_p6 = scmp.lt.s32.totalorder %s45_s23, %s45_s23 }
  0x2d   :  { %p1731_p5 = scmp.ne.s32.totalorder %s45_s23, %s1730_s0  ;;  %p1736_p7 = scmp.lt.s32.totalorder %s1730_s0, %s1730_s0 }
  0x2f   :  { %p1737_p8 = por %p1736_p7, %p1735_p6 }
  0x31   :  { %p1738_p9 = pnand %p1737_p8, %p1731_p5 }
  0x33   :  { %1741 = shalt.err (!%p1738_p9)
}
  0x34   :  { %50 = dma.hbm_to_vmem [thread:$0]  %s2108_s2, 512, %s45_s23, [#allocation8], %s1796_s9, %s1796_s9, %s1797_s10  }
  0x35   :  { %s1742_s15 = scalar_lea.hbm %s2110_s4, 512 }
  0x36   :  { %p1743_p10 = scmp.ne.s32.totalorder %s2110_s4, %s1742_s15  ;;  %p1746_p11 = scmp.lt.u32.totalorder %s1742_s15, %s2110_s4 }
  0x38   :  { %p1748_p12 = pnand %p1746_p11, %p1743_p10 }
  0x3a   :  { %1751 = shalt.err (!%p1748_p12)
}
  0x3b   :  { %s1752_s20 = scalar_lea.vmem %s1878_s26, 512  ;;  %p1757_p0 = scmp.lt.s32.totalorder %s1878_s26, %s1878_s26 }
  0x3c   :  { %p1753_p13 = scmp.ne.s32.totalorder %s1878_s26, %s1752_s20  ;;  %p1758_p1 = scmp.lt.s32.totalorder %s1752_s20, %s1752_s20 }
  0x3e   :  { %p1759_p2 = por %p1758_p1, %p1757_p0 }
  0x40   :  { %p1760_p3 = pnand %p1759_p2, %p1753_p13 }
  0x42   :  { %1763 = shalt.err (!%p1760_p3)
}
  0x43   :  { %64 = dma.hbm_to_vmem [thread:$0]  %s2110_s4, 512, %s1878_s26, [#allocation11], %s1796_s9, %s1796_s9, %s1797_s10  }
  0x44   :  { %1786 = dma.done.wait [#allocation5], 1024  }
  0x45   :  { %1787 = vsyncadd [#allocation5], 4294966272 }
  0x46   :  { %1788 = dma.done.wait [#allocation8], 768  }
  0x47   :  { %1789 = vsyncadd [#allocation8], 4294966528 }
  0x48   :  { %1790 = dma.done.wait [#allocation11], 512  }
  0x49   :  { %1791 = vsyncadd [#allocation11], 4294966784  ;;  %vm100_vm0 = vcmask 130048   ;;  %v92_v0 = vld [vmem:[#allocation7] sm:$0xff]  ;;  %v93_v1 = vld [vmem:[#allocation7 + $0x8] sm:$0xff]  ;;  %v1800_v10 = vmov 0.0|0.0  }
  0x4a   :  { %v88_v2 = vld [vmem:[#allocation4 + $0x20] sm:$0xff]  ;;  %v1520_v3 = vpack.c.bf16 %v93_v1, %v92_v0  ;;  %v79_v4 = vld [vmem:[#allocation9] sm:$0xff]  ;;  %v80_v5 = vld [vmem:[#allocation9 + $0x8] sm:$0xff]  ;;  %vm1801_vm1 = vmmov 0   ;;  %v1802_v16 = vmov 0.0   ;;  %s1803_s22 = smov 64  }
  0x4b   :  { %1406 = vmatprep.mubr.msk.f32.mxu1 %vm100_vm0, %v88_v2  ;;  %v84_v6 = vld [vmem:[#allocation4] sm:$0xff]  ;;  %v89_v7 = vld [vmem:[#allocation4 + $0x28] sm:$0xff]  ;;  %v1916_v8 = vpack.c.bf16 %v80_v5, %v79_v4  ;;  %v90_v11 = vld [vmem:[#allocation4 + $0x30] sm:$0xff]  ;;  %vm239_vm2 = vcmask 261120  }
  0x4c   :  { %1580 = vmatprep.subr.bf16.mxu1 %v1520_v3  ;;  %1521 = vmatprep.subr.bf16.mxu0 %v1520_v3  ;;  %v85_v9 = vld [vmem:[#allocation4 + $0x8] sm:$0xff]  ;;  %v81_v12 = vld [vmem:[#allocation9 + $0x10] sm:$0xff]  ;;  %v91_v14 = vld [vmem:[#allocation4 + $0x38] sm:$0xff] }
  0x4d   :  { %1581 = vmatpush3.bf16.msra.mxu1 %v1520_v3  ;;  %1523 = vmatpush3.bf16.msra.mxu0 %v1520_v3  ;;  %v82_v13 = vld [vmem:[#allocation9 + $0x18] sm:$0xff]  ;;  %v1951_v21 = vld [vmem:[%s2109_s3] ss:$0 sm:$0xff]  ;;  %s1804_s3 = smov 32   ;;  %v86_v56 = vld [vmem:[#allocation4 + $0x10] sm:$0xff] }
  0x4e   :  { %1524 = vmatprep.subr.bf16.mxu1 %v1800_v10  ;;  %1400 = vmatprep.mubr.msk.f32.mxu0 %vm100_vm0, %v84_v6  ;;  %v1925_v15 = vpack.c.bf16 %v82_v13, %v81_v12  ;;  %v87_v57 = vld [vmem:[#allocation4 + $0x18] sm:$0xff] }
  0x4f   :  { %1536 = vmatprep.subr.bf16.mxu0 %v1800_v10 }
  0x50   :  { %1407 = vmatmul.mubr.msk.f32.vlgmr.msra.gmra.mrb[0].mxu1 %vm100_vm0, %v89_v7  ;;  %1401 = vmatmul.mubr.msk.f32.vlgmr.msra.gmra.mrb[0].mxu0 %vm100_vm0, %v85_v9 }
  0x51   :  { %1526 = vmatpush3.bf16.msra.mxu1 %v1916_v8  ;;  %1409 = vmatprep.mubr.msk.f32.mxu1 %vm100_vm0, %v90_v11 }
  0x52   :  { %1527 = vmatprep.subr.bf16.mxu1 %v1800_v10  ;;  %1538 = vmatpush3.bf16.msra.mxu0 %v1916_v8 }
  0x53   :  { %1539 = vmatprep.subr.bf16.mxu0 %v1800_v10  ;;  %1403 = vmatprep.mubr.msk.f32.mxu0 %vm100_vm0, %v86_v56 }
  0x54   :  { %1410 = vmatmul.mubr.msk.f32.gmra.mrb[2].mxu1 %vm100_vm0, %v91_v14  ;;  %1404 = vmatmul.mubr.msk.f32.gmra.mrb[2].mxu0 %vm100_vm0, %v87_v57 }
  0x55   :  { %1529 = vmatpush3.bf16.msra.mxu1 %v1925_v15  ;;  %1420 = vmatprep.mubr.msk.f32.mxu1 %vm1801_vm1, %v1802_v16 }
  0x56   :  { %1530 = vmatprep.subr.bf16.mxu1 %v1800_v10  ;;  %1541 = vmatpush3.bf16.msra.mxu0 %v1925_v15 }
  0x57   :  { %1548 = vmatprep.subr.bf16.mxu0 %v1800_v10  ;;  %1442 = vmatprep.mubr.msk.f32.mxu0 %vm1801_vm1, %v1802_v16 }
  0x58   :  { %1421 = vmatmul.mubr.f32.vlgmr.msra.gmra.mrb[4].mxu1 %v1802_v16 }
  0x59   :  { %1532 = vmatpush3.bf16.msra.mxu1 %v1916_v8  ;;  %1431 = vmatprep.mubr.msk.f32.mxu1 %vm1801_vm1, %v1802_v16 }
  0x5a   :  { %1533 = vmatprep.subr.bf16.mxu1 %v1800_v10 }
  0x5d   :  { %1535 = vmatpush3.bf16.msra.mxu1 %v1925_v15 }
  0x5e   :  { %1542 = vmatprep.subr.bf16.mxu1 %v1800_v10 }
 0x123   :  { %v1944_v17 = vpop.f32.mrb[0].mxu1  ;;  %v1402_v18 = vpop.f32.mrb[0].mxu0 }
 0x124   :  { %v1946_v19 = vpop.f32.mrb[1].mxu1  ;;  %v191_v20 = vpop.f32.mrb[1].mxu0  ;;  %v197_v42 = vadd.f32 %v1402_v18, %v1951_v21 }
 0x125   :  { %v192_v24 = vadd.f32 %v1951_v21, %v191_v20 }
 0x127   :  { %v1953_v22 = vpop.f32.mrb[2].mxu1  ;;  %v1405_v61 = vpop.f32.mrb[2].mxu0 }
 0x128   :  { %v1955_v23 = vpop.f32.mrb[3].mxu1  ;;  %v201_v62 = vpop.f32.mrb[3].mxu0 }
 0x129   :  { %v202_v0 = vadd.f32 %v1951_v21, %v201_v62  ;;  %v217_v62 = vadd.f32 %v1944_v17, %v1951_v21 }
 0x12b   :  { %v309_v25 = vpop.f32.mrb[4].mxu1 }
 0x12c   :  { %v313_v26 = vadd.f32 %v309_v25, %v192_v24  ;;  %v1422_v27 = vpop.f32.mrb[5].mxu1 }
 0x12d   :  { %v207_v27 = vadd.f32 %v1405_v61, %v1951_v21 }
 0x12e   :  { %1594 = vtanh.f32 %v313_v26  ;;  %v1310_v29 = vmul.f32 -1.442695, %v313_v26 }
 0x130   :  { %1596 = vpow2.f32 %v1310_v29 }
 0x138   :  { %v1595_v28 = vpop.eup %1594 }
 0x139   :  { %323 = vrot.lane.b32.xlu0 %v1595_v28, %s1803_s22 }
 0x13a   :  { %v1597_v30 = vpop.eup %1596 }
 0x13b   :  { %v317_v31 = vadd.f32 1.0, %v1597_v30 }
 0x13d   :  { %1598 = vrcp.f32 %v317_v31 }
 0x147   :  { %v1599_v32 = vpop.eup %1598 }
 0x148   :  { %v321_v35 = vmul.f32 0.0, %v1599_v32 }
 0x1ab   :  { %v324_v33 = vpop.permute.xlu0 %323 }
 0x1ac   :  { %v326_v34 = vmul.f32 %v1599_v32, %v324_v33 }
 0x1ae   :  { %328 = vrot.lane.b32.xlu0 %v326_v34, %s1804_s3 }
 0x220   :  { %v329_v36 = vpop.permute.xlu0 %328 }
 0x221   :  { %v331_v37 = vadd.f32 %v329_v36, %v321_v35 }
 0x223   :  { %1600 = vtanh.f32 %v331_v37 }
 0x22d   :  { %v1601_v38 = vpop.eup %1600 }
 0x22e   :  { %334 = vrot.lane.b32.xlu1 %v1601_v38, %s1803_s22 }
 0x2a0   :  { %v335_v39 = vpop.permute.xlu1 %334 }
 0x2a1   :  { %v337_v40 = vmul.f32 %v1599_v32, %v335_v39 }
 0x2a3   :  { %339 = vrot.lane.b32.xlu1 %v337_v40, %s1804_s3 }
 0x315   :  { %v340_v41 = vpop.permute.xlu1 %339 }
 0x316   :  { %342 = vst.msk [vmem:[#allocation3] sm:$0xff] %vm239_vm2, %v340_v41  ;;  %1432 = vmatmul.mubr.msk.f32.vlgmr.msra.gmra.mrb[6].mxu1 %vm239_vm2, %v340_v41 }
 0x317   :  { %1544 = vmatpush3.bf16.msra.mxu1 %v1916_v8  ;;  %1453 = vmatprep.mubr.msk.f32.mxu1 %vm1801_vm1, %v1802_v16 }
 0x318   :  { %1545 = vmatprep.subr.bf16.mxu1 %v1800_v10 }
 0x31b   :  { %1547 = vmatpush3.bf16.msra.mxu1 %v1925_v15 }
 0x31c   :  { %1554 = vmatprep.subr.bf16.mxu1 %v1800_v10 }
 0x3e9   :  { %v413_v43 = vpop.f32.mrb[6].mxu1 }
 0x3ea   :  { %v417_v44 = vadd.f32 %v413_v43, %v197_v42  ;;  %v1433_v45 = vpop.f32.mrb[7].mxu1 }
 0x3eb   :  { %v212_v45 = vadd.f32 %v1951_v21, %v1946_v19 }
 0x3ec   :  { %1602 = vtanh.f32 %v417_v44  ;;  %v1312_v47 = vmul.f32 -1.442695, %v417_v44 }
 0x3ee   :  { %1604 = vpow2.f32 %v1312_v47 }
 0x3f6   :  { %v1603_v46 = vpop.eup %1602 }
 0x3f7   :  { %427 = vrot.lane.b32.xlu0 %v1603_v46, %s1803_s22 }
 0x3f8   :  { %v1605_v48 = vpop.eup %1604 }
 0x3f9   :  { %v421_v49 = vadd.f32 1.0, %v1605_v48 }
 0x3fb   :  { %1606 = vrcp.f32 %v421_v49 }
 0x405   :  { %v1607_v50 = vpop.eup %1606 }
 0x406   :  { %v425_v53 = vmul.f32 %v1607_v50, %v331_v37 }
 0x469   :  { %v428_v51 = vpop.permute.xlu0 %427 }
 0x46a   :  { %v430_v52 = vmul.f32 %v1607_v50, %v428_v51 }
 0x46c   :  { %432 = vrot.lane.b32.xlu1 %v430_v52, %s1804_s3 }
 0x4de   :  { %v433_v54 = vpop.permute.xlu1 %432 }
 0x4df   :  { %v435_v55 = vadd.f32 %v433_v54, %v425_v53 }
 0x4e1   :  { %1608 = vtanh.f32 %v435_v55 }
 0x4eb   :  { %v1609_v58 = vpop.eup %1608 }
 0x4ec   :  { %438 = vrot.lane.b32.xlu0 %v1609_v58, %s1803_s22 }
 0x55e   :  { %v439_v59 = vpop.permute.xlu0 %438 }
 0x55f   :  { %v441_v60 = vmul.f32 %v1607_v50, %v439_v59 }
 0x561   :  { %443 = vrot.lane.b32.xlu1 %v441_v60, %s1804_s3 }
 0x5d3   :  { %v444_v63 = vpop.permute.xlu1 %443 }
 0x5d4   :  { %447 = vst.msk [vmem:[#allocation3 + $0x8] sm:$0xff] %vm239_vm2, %v444_v63  ;;  %1443 = vmatmul.mubr.msk.f32.vlgmr.msra.gmra.mrb[4].mxu0 %vm239_vm2, %v444_v63 }
 0x5d5   :  { %1550 = vmatpush3.bf16.msra.mxu0 %v1916_v8  ;;  %1464 = vmatprep.mubr.msk.f32.mxu0 %vm1801_vm1, %v1802_v16 }
 0x5d6   :  { %1551 = vmatprep.subr.bf16.mxu0 %v1800_v10 }
 0x5d9   :  { %1553 = vmatpush3.bf16.msra.mxu0 %v1925_v15 }
 0x5da   :  { %1560 = vmatprep.subr.bf16.mxu0 %v1800_v10 }
 0x6a7   :  { %v518_v1 = vpop.f32.mrb[4].mxu0 }
 0x6a8   :  { %v522_v2 = vadd.f32 %v518_v1, %v202_v0  ;;  %v1444_v3 = vpop.f32.mrb[5].mxu0 }
 0x6aa   :  { %1610 = vtanh.f32 %v522_v2  ;;  %v1314_v5 = vmul.f32 -1.442695, %v522_v2 }
 0x6ac   :  { %1612 = vpow2.f32 %v1314_v5 }
 0x6b4   :  { %v1611_v4 = vpop.eup %1610 }
 0x6b5   :  { %532 = vrot.lane.b32.xlu0 %v1611_v4, %s1803_s22 }
 0x6b6   :  { %v1613_v6 = vpop.eup %1612 }
 0x6b7   :  { %v526_v7 = vadd.f32 1.0, %v1613_v6 }
 0x6b9   :  { %1614 = vrcp.f32 %v526_v7  ;;  %v1086_v7 = vld [vmem:[#allocation10] sm:$0xff] }
 0x6c3   :  { %v1615_v9 = vpop.eup %1614 }
 0x6c4   :  { %v530_v13 = vmul.f32 %v1615_v9, %v435_v55 }
 0x727   :  { %v533_v11 = vpop.permute.xlu0 %532 }
 0x728   :  { %v535_v12 = vmul.f32 %v1615_v9, %v533_v11 }
 0x72a   :  { %537 = vrot.lane.b32.xlu1 %v535_v12, %s1804_s3 }
 0x79c   :  { %v538_v14 = vpop.permute.xlu1 %537 }
 0x79d   :  { %v540_v18 = vadd.f32 %v538_v14, %v530_v13 }
 0x79f   :  { %1616 = vtanh.f32 %v540_v18 }
 0x7a9   :  { %v1617_v20 = vpop.eup %1616 }
 0x7aa   :  { %543 = vrot.lane.b32.xlu0 %v1617_v20, %s1803_s22  ;;  %v1089_v20 = vld [vmem:[#allocation10 + $0x18] sm:$0xff] }
 0x81c   :  { %v544_v24 = vpop.permute.xlu0 %543 }
 0x81d   :  { %v546_v25 = vmul.f32 %v1615_v9, %v544_v24  ;;  %v1087_v9 = vld [vmem:[#allocation10 + $0x8] sm:$0xff] }
 0x81e   :  { %v1572_v11 = vpack.c.bf16 %v1087_v9, %v1086_v7 }
 0x81f   :  { %548 = vrot.lane.b32.xlu1 %v546_v25, %s1804_s3 }
 0x891   :  { %v549_v26 = vpop.permute.xlu1 %548 }
 0x892   :  { %552 = vst.msk [vmem:[#allocation3 + $0x10] sm:$0xff] %vm239_vm2, %v549_v26  ;;  %1454 = vmatmul.mubr.msk.f32.vlgmr.msra.gmra.mrb[8].mxu1 %vm239_vm2, %v549_v26  ;;  %v1078_v26 = vld [vmem:[#allocation3] sm:$0xff] }
 0x893   :  { %1556 = vmatpush3.bf16.msra.mxu1 %v1916_v8  ;;  %1475 = vmatprep.mubr.msk.f32.mxu1 %vm1801_vm1, %v1802_v16 }
 0x894   :  { %1557 = vmatprep.subr.bf16.mxu1 %v1800_v10 }
 0x897   :  { %1559 = vmatpush3.bf16.msra.mxu1 %v1925_v15 }
 0x898   :  { %1566 = vmatprep.subr.bf16.mxu1 %v1800_v10 }
 0x965   :  { %v623_v28 = vpop.f32.mrb[8].mxu1 }
 0x966   :  { %v627_v29 = vadd.f32 %v623_v28, %v207_v27  ;;  %v1455_v30 = vpop.f32.mrb[9].mxu1  ;;  %v1079_v27 = vld [vmem:[#allocation3 + $0x8] sm:$0xff]  ;;  %v1080_v28 = vld [vmem:[#allocation3 + $0x10] sm:$0xff] }
 0x968   :  { %1618 = vtanh.f32 %v627_v29  ;;  %v1316_v32 = vmul.f32 -1.442695, %v627_v29 }
 0x96a   :  { %1620 = vpow2.f32 %v1316_v32  ;;  %v222_v32 = vadd.f32 %v1951_v21, %v1955_v23 }
 0x972   :  { %v1619_v31 = vpop.eup %1618 }
 0x973   :  { %637 = vrot.lane.b32.xlu0 %v1619_v31, %s1803_s22 }
 0x974   :  { %v1621_v33 = vpop.eup %1620 }
 0x975   :  { %v631_v34 = vadd.f32 1.0, %v1621_v33 }
 0x977   :  { %1622 = vrcp.f32 %v631_v34 }
 0x981   :  { %v1623_v35 = vpop.eup %1622 }
 0x982   :  { %v635_v38 = vmul.f32 %v1623_v35, %v540_v18  ;;  %v1088_v18 = vld [vmem:[#allocation10 + $0x10] sm:$0xff] }
 0x983   :  { %v1576_v24 = vpack.c.bf16 %v1089_v20, %v1088_v18 }
 0x9e5   :  { %v638_v36 = vpop.permute.xlu0 %637 }
 0x9e6   :  { %v640_v37 = vmul.f32 %v1623_v35, %v638_v36 }
 0x9e8   :  { %642 = vrot.lane.b32.xlu1 %v640_v37, %s1804_s3 }
 0xa5a   :  { %v643_v39 = vpop.permute.xlu1 %642 }
 0xa5b   :  { %v645_v40 = vadd.f32 %v643_v39, %v635_v38 }
 0xa5d   :  { %1624 = vtanh.f32 %v645_v40 }
 0xa67   :  { %v1625_v41 = vpop.eup %1624 }
 0xa68   :  { %648 = vrot.lane.b32.xlu0 %v1625_v41, %s1803_s22  ;;  %v2048_v41 = vld [vmem:[%s2111_s5] ss:$0 sm:$0xff]  ;;  %s1805_s5 = smov [#allocation12]  }
 0xa69   :  { %s1287_s26 = sshll.u32 %s1805_s5, 4  ;;  %s1288_s26 = int_to_ptr.vmem [resolvable:$true] %s1287_s26 }
 0xa6a   :  { %s1764_s27 = scalar_lea.vmem %s1288_s26, 1024  ;;  %p1769_p5 = scmp.lt.s32.totalorder %s1288_s26, %s1288_s26 }
 0xa6b   :  { %p1765_p4 = scmp.ne.s32.totalorder %s1288_s26, %s1764_s27  ;;  %p1770_p6 = scmp.lt.s32.totalorder %s1764_s27, %s1764_s27 }
 0xa6d   :  { %p1771_p7 = por %p1770_p6, %p1769_p5 }
 0xa6f   :  { %p1772_p8 = pnand %p1771_p7, %p1765_p4 }
 0xada   :  { %v649_v42 = vpop.permute.xlu0 %648 }
 0xadb   :  { %v651_v43 = vmul.f32 %v1623_v35, %v649_v42 }
 0xadd   :  { %653 = vrot.lane.b32.xlu1 %v651_v43, %s1804_s3 }
 0xb4f   :  { %v654_v44 = vpop.permute.xlu1 %653 }
 0xb50   :  { %657 = vst.msk [vmem:[#allocation3 + $0x18] sm:$0xff] %vm239_vm2, %v654_v44  ;;  %1465 = vmatmul.mubr.msk.f32.vlgmr.msra.gmra.mrb[6].mxu0 %vm239_vm2, %v654_v44 }
 0xb51   :  { %1562 = vmatpush3.bf16.msra.mxu0 %v1916_v8  ;;  %1486 = vmatprep.mubr.msk.f32.mxu0 %vm1801_vm1, %v1802_v16 }
 0xb52   :  { %1563 = vmatprep.subr.bf16.mxu0 %v1800_v10 }
 0xb55   :  { %1565 = vmatpush3.bf16.msra.mxu0 %v1925_v15 }
 0xb56   :  { %1573 = vmatprep.subr.bf16.mxu0 %v1572_v11 }
 0xb57   :  { %v1081_v29 = vld [vmem:[#allocation3 + $0x18] sm:$0xff] }
 0xc23   :  { %v728_v46 = vpop.f32.mrb[6].mxu0 }
 0xc24   :  { %v732_v47 = vadd.f32 %v728_v46, %v212_v45  ;;  %v1466_v48 = vpop.f32.mrb[7].mxu0 }
 0xc26   :  { %1626 = vtanh.f32 %v732_v47  ;;  %v1318_v50 = vmul.f32 -1.442695, %v732_v47 }
 0xc28   :  { %1628 = vpow2.f32 %v1318_v50 }
 0xc30   :  { %v1627_v49 = vpop.eup %1626 }
 0xc31   :  { %742 = vrot.lane.b32.xlu0 %v1627_v49, %s1803_s22 }
 0xc32   :  { %v1629_v51 = vpop.eup %1628 }
 0xc33   :  { %v736_v52 = vadd.f32 1.0, %v1629_v51 }
 0xc35   :  { %1630 = vrcp.f32 %v736_v52 }
 0xc3f   :  { %v1631_v53 = vpop.eup %1630 }
 0xc40   :  { %v740_v56 = vmul.f32 %v1631_v53, %v645_v40 }
 0xca3   :  { %v743_v54 = vpop.permute.xlu0 %742 }
 0xca4   :  { %v745_v55 = vmul.f32 %v1631_v53, %v743_v54 }
 0xca6   :  { %747 = vrot.lane.b32.xlu1 %v745_v55, %s1804_s3 }
 0xd18   :  { %v748_v57 = vpop.permute.xlu1 %747 }
 0xd19   :  { %v750_v19 = vadd.f32 %v748_v57, %v740_v56 }
 0xd1b   :  { %1632 = vtanh.f32 %v750_v19 }
 0xd25   :  { %v1633_v58 = vpop.eup %1632 }
 0xd26   :  { %753 = vrot.lane.b32.xlu0 %v1633_v58, %s1803_s22 }
 0xd98   :  { %v754_v59 = vpop.permute.xlu0 %753 }
 0xd99   :  { %v756_v60 = vmul.f32 %v1631_v53, %v754_v59 }
 0xd9b   :  { %758 = vrot.lane.b32.xlu1 %v756_v60, %s1804_s3 }
 0xe0d   :  { %v759_v61 = vpop.permute.xlu1 %758 }
 0xe0e   :  { %762 = vst.msk [vmem:[#allocation3 + $0x20] sm:$0xff] %vm239_vm2, %v759_v61  ;;  %1476 = vmatmul.mubr.msk.f32.vlgmr.msra.gmra.mrb[10].mxu1 %vm239_vm2, %v759_v61 }
 0xe0f   :  { %1568 = vmatpush3.bf16.msra.mxu1 %v1916_v8  ;;  %1497 = vmatprep.mubr.msk.f32.mxu1 %vm1801_vm1, %v1802_v16 }
 0xe10   :  { %1569 = vmatprep.subr.bf16.mxu1 %v1800_v10 }
 0xe13   :  { %1571 = vmatpush3.bf16.msra.mxu1 %v1925_v15 }
 0xe15   :  { %v1082_v30 = vld [vmem:[#allocation3 + $0x20] sm:$0xff] }
 0xee1   :  { %v833_v63 = vpop.f32.mrb[10].mxu1 }
 0xee2   :  { %v837_v0 = vadd.f32 %v833_v63, %v217_v62  ;;  %v1477_v1 = vpop.f32.mrb[11].mxu1  ;;  %v227_v63 = vadd.f32 %v1953_v22, %v1951_v21 }
 0xee4   :  { %1634 = vtanh.f32 %v837_v0  ;;  %v1320_v3 = vmul.f32 -1.442695, %v837_v0 }
 0xee6   :  { %1636 = vpow2.f32 %v1320_v3 }
 0xeee   :  { %v1635_v2 = vpop.eup %1634 }
 0xeef   :  { %847 = vrot.lane.b32.xlu0 %v1635_v2, %s1803_s22 }
 0xef0   :  { %v1637_v8 = vpop.eup %1636 }
 0xef1   :  { %v841_v4 = vadd.f32 1.0, %v1637_v8 }
 0xef3   :  { %1638 = vrcp.f32 %v841_v4 }
 0xefd   :  { %v1639_v16 = vpop.eup %1638 }
 0xefe   :  { %v845_v15 = vmul.f32 %v1639_v16, %v750_v19 }
 0xf61   :  { %v848_v5 = vpop.permute.xlu0 %847 }
 0xf62   :  { %v850_v10 = vmul.f32 %v1639_v16, %v848_v5 }
 0xf64   :  { %852 = vrot.lane.b32.xlu1 %v850_v10, %s1804_s3 }
 0xfd6   :  { %v853_v6 = vpop.permute.xlu1 %852 }
 0xfd7   :  { %v855_v17 = vadd.f32 %v853_v6, %v845_v15 }
 0xfd9   :  { %1640 = vtanh.f32 %v855_v17 }
 0xfe3   :  { %v1641_v12 = vpop.eup %1640 }
 0xfe4   :  { %858 = vrot.lane.b32.xlu0 %v1641_v12, %s1803_s22 }
0x1056   :  { %v859_v13 = vpop.permute.xlu0 %858 }
0x1057   :  { %v861_v14 = vmul.f32 %v1639_v16, %v859_v13 }
0x1059   :  { %863 = vrot.lane.b32.xlu1 %v861_v14, %s1804_s3 }
0x10cb   :  { %v864_v25 = vpop.permute.xlu1 %863 }
0x10cc   :  { %867 = vst.msk [vmem:[#allocation3 + $0x28] sm:$0xff] %vm239_vm2, %v864_v25  ;;  %1487 = vmatmul.mubr.msk.f32.vlgmr.msra.gmra.mrb[8].mxu0 %vm239_vm2, %v864_v25 }
0x10cd   :  { %1575 = vmatpush3.bf16.msra.mxu0 %v1572_v11  ;;  %1508 = vmatprep.mubr.msk.f32.mxu0 %vm239_vm2, %v1078_v26 }
0x10ce   :  { %1577 = vmatprep.subr.bf16.mxu0 %v1576_v24 }
0x10d1   :  { %1579 = vmatpush3.bf16.msra.mxu0 %v1576_v24 }
0x10d3   :  { %v1083_v31 = vld [vmem:[#allocation3 + $0x28] sm:$0xff] }
0x10d4   :  { %1509 = vmatmul.mubr.msk.f32.vlgmr.msra.gmra.mrb[10].mxu0 %vm239_vm2, %v1079_v27 }
0x10d5   :  { %1511 = vmatprep.mubr.msk.f32.mxu0 %vm239_vm2, %v1080_v28 }
0x10d8   :  { %1512 = vmatmul.mubr.msk.f32.gmra.mrb[12].mxu0 %vm239_vm2, %v1081_v29 }
0x10d9   :  { %1514 = vmatprep.mubr.msk.f32.mxu0 %vm239_vm2, %v1082_v30 }
0x10dc   :  { %1515 = vmatmul.mubr.msk.f32.gmra.mrb[14].mxu0 %vm239_vm2, %v1083_v31 }
0x119f   :  { %v938_v33 = vpop.f32.mrb[8].mxu0 }
0x11a0   :  { %v942_v34 = vadd.f32 %v938_v33, %v222_v32  ;;  %v1488_v35 = vpop.f32.mrb[9].mxu0 }
0x11a2   :  { %1642 = vtanh.f32 %v942_v34  ;;  %v1322_v50 = vmul.f32 -1.442695, %v942_v34 }
0x11a4   :  { %1644 = vpow2.f32 %v1322_v50 }
0x11a7   :  { %v1510_v36 = vpop.f32.mrb[10].mxu0 }
0x11a8   :  { %v1187_v37 = vpop.f32.mrb[11].mxu0  ;;  %v2052_v23 = vadd.f32 %v1510_v36, %v2048_v41 }
0x11a9   :  { %v2058_v45 = vadd.f32 %v2048_v41, %v1187_v37 }
0x11ab   :  { %v2041_v38 = vpop.f32.mrb[12].mxu0 }
0x11ac   :  { %v1643_v39 = vpop.eup %1642  ;;  %v2043_v40 = vpop.f32.mrb[13].mxu0  ;;  %v1203_v14 = vadd.f32 %v2041_v38, %v2048_v41 }
0x11ad   :  { %952 = vrot.lane.b32.xlu0 %v1643_v39, %s1803_s22  ;;  %v1198_v24 = vadd.f32 %v2048_v41, %v2043_v40 }
0x11ae   :  { %v1645_v51 = vpop.eup %1644 }
0x11af   :  { %v1516_v42 = vpop.f32.mrb[14].mxu0  ;;  %v946_v52 = vadd.f32 1.0, %v1645_v51 }
0x11b0   :  { %v2055_v43 = vadd.f32 %v1516_v42, %v2048_v41  ;;  %v1207_v44 = vpop.f32.mrb[15].mxu0 }
0x11b1   :  { %v2061_v46 = vadd.f32 %v2048_v41, %v1207_v44  ;;  %1646 = vrcp.f32 %v946_v52 }
0x11b2   :  { %v1227_v47 = vmax.f32 %v2052_v23, %v2055_v43 }
0x11b3   :  { %v1226_v48 = vmax.f32 %v2058_v45, %v2061_v46 }
0x11b5   :  { %v1230_v49 = vmax.f32 %v1226_v48, %v1227_v47 }
0x11bb   :  { %v1647_v53 = vpop.eup %1646 }
0x11bc   :  { %v950_v56 = vmul.f32 %v1647_v53, %v855_v17 }
0x121f   :  { %v953_v54 = vpop.permute.xlu0 %952 }
0x1220   :  { %v955_v55 = vmul.f32 %v1647_v53, %v953_v54 }
0x1222   :  { %957 = vrot.lane.b32.xlu1 %v955_v55, %s1804_s3 }
0x1294   :  { %v958_v57 = vpop.permute.xlu1 %957 }
0x1295   :  { %v960_v19 = vadd.f32 %v958_v57, %v950_v56 }
0x1297   :  { %1648 = vtanh.f32 %v960_v19 }
0x12a1   :  { %v1649_v58 = vpop.eup %1648 }
0x12a2   :  { %963 = vrot.lane.b32.xlu0 %v1649_v58, %s1803_s22 }
0x1314   :  { %v964_v59 = vpop.permute.xlu0 %963 }
0x1315   :  { %v966_v60 = vmul.f32 %v1647_v53, %v964_v59 }
0x1317   :  { %968 = vrot.lane.b32.xlu1 %v966_v60, %s1804_s3 }
0x1389   :  { %v969_v61 = vpop.permute.xlu1 %968 }
0x138a   :  { %972 = vst.msk [vmem:[#allocation3 + $0x30] sm:$0xff] %vm239_vm2, %v969_v61  ;;  %1498 = vmatmul.mubr.msk.f32.vlgmr.msra.gmra.mrb[12].mxu1 %vm239_vm2, %v969_v61 }
0x1391   :  { %v1084_v62 = vld [vmem:[#allocation3 + $0x30] sm:$0xff] }
0x1392   :  { %1517 = vmatprep.mubr.msk.f32.mxu0 %vm239_vm2, %v1084_v62 }
0x145d   :  { %v1043_v0 = vpop.f32.mrb[12].mxu1 }
0x145e   :  { %v1047_v1 = vadd.f32 %v1043_v0, %v227_v63  ;;  %v1499_v2 = vpop.f32.mrb[13].mxu1 }
0x1460   :  { %1650 = vtanh.f32 %v1047_v1  ;;  %v1324_v8 = vmul.f32 -1.442695, %v1047_v1 }
0x1462   :  { %1652 = vpow2.f32 %v1324_v8 }
0x146a   :  { %v1651_v3 = vpop.eup %1650 }
0x146b   :  { %1057 = vrot.lane.b32.xlu0 %v1651_v3, %s1803_s22 }
0x146c   :  { %v1653_v4 = vpop.eup %1652 }
0x146d   :  { %v1051_v16 = vadd.f32 1.0, %v1653_v4 }
0x146f   :  { %1654 = vrcp.f32 %v1051_v16 }
0x1479   :  { %v1655_v5 = vpop.eup %1654 }
0x147a   :  { %v1055_v6 = vmul.f32 %v1655_v5, %v960_v19 }
0x14dd   :  { %v1058_v10 = vpop.permute.xlu0 %1057 }
0x14de   :  { %v1060_v15 = vmul.f32 %v1655_v5, %v1058_v10 }
0x14e0   :  { %1062 = vrot.lane.b32.xlu1 %v1060_v15, %s1804_s3 }
0x1552   :  { %v1063_v17 = vpop.permute.xlu1 %1062 }
0x1553   :  { %v1065_v21 = vadd.f32 %v1063_v17, %v1055_v6 }
0x1555   :  { %1656 = vtanh.f32 %v1065_v21 }
0x155f   :  { %v1657_v22 = vpop.eup %1656 }
0x1560   :  { %1068 = vrot.lane.b32.xlu0 %v1657_v22, %s1803_s22 }
0x15d2   :  { %v1069_v7 = vpop.permute.xlu0 %1068 }
0x15d3   :  { %v1071_v9 = vmul.f32 %v1655_v5, %v1069_v7 }
0x15d5   :  { %1073 = vrot.lane.b32.xlu1 %v1071_v9, %s1804_s3 }
0x1647   :  { %v1074_v11 = vpop.permute.xlu1 %1073 }
0x1648   :  { %1077 = vst.msk [vmem:[#allocation3 + $0x38] sm:$0xff] %vm239_vm2, %v1074_v11 }
0x164f   :  { %v1085_v12 = vld [vmem:[#allocation3 + $0x38] sm:$0xff] }
0x1650   :  { %1518 = vmatmul.mubr.msk.f32.gmra.mrb[16].mxu0 %vm239_vm2, %v1085_v12 }
0x1723   :  { %v1519_v13 = vpop.f32.mrb[16].mxu0 }
0x1724   :  { %v1223_v18 = vadd.f32 %v1519_v13, %v2048_v41  ;;  %v1217_v20 = vpop.f32.mrb[17].mxu0 }
0x1725   :  { %v1218_v25 = vadd.f32 %v2048_v41, %v1217_v20 }
0x1726   :  { %v1229_v26 = vmax.f32 %v1203_v14, %v1223_v18 }
0x1727   :  { %v1228_v27 = vmax.f32 %v1198_v24, %v1218_v25 }
0x1729   :  { %v1231_v28 = vmax.f32 %v1228_v27, %v1229_v26 }
0x172b   :  { %v1232_v29 = vmax.f32 %v1230_v49, %v1231_v28 }
0x172d   :  { %v1233_v30 = vsub.f32 %v2058_v45, %v1232_v29  ;;  %v1234_v31 = vsub.f32 %v2052_v23, %v1232_v29  ;;  %v1235_v32 = vsub.f32 %v1198_v24, %v1232_v29  ;;  %v1236_v33 = vsub.f32 %v1203_v14, %v1232_v29 }
0x172e   :  { %v1237_v34 = vsub.f32 %v2061_v46, %v1232_v29  ;;  %v1238_v35 = vsub.f32 %v2055_v43, %v1232_v29  ;;  %v1239_v36 = vsub.f32 %v1218_v25, %v1232_v29  ;;  %v1240_v37 = vsub.f32 %v1223_v18, %v1232_v29 }
0x172f   :  { %v1241_v38 = vmul.f32 1.442695, %v1233_v30  ;;  %v1243_v39 = vmul.f32 1.442695, %v1234_v31  ;;  %v1245_v40 = vmul.f32 1.442695, %v1235_v32 }
0x1730   :  { %v1247_v41 = vmul.f32 1.442695, %v1236_v33  ;;  %v1249_v42 = vmul.f32 1.442695, %v1237_v34  ;;  %v1251_v44 = vmul.f32 1.442695, %v1238_v35 }
0x1731   :  { %1658 = vpow2.f32 %v1241_v38  ;;  %v1253_v23 = vmul.f32 1.442695, %v1239_v36  ;;  %v1255_v45 = vmul.f32 1.442695, %v1240_v37 }
0x1732   :  { %1660 = vpow2.f32 %v1243_v39 }
0x1733   :  { %1662 = vpow2.f32 %v1245_v40 }
0x1734   :  { %1664 = vpow2.f32 %v1247_v41 }
0x1735   :  { %1666 = vpow2.f32 %v1249_v42 }
0x1736   :  { %1668 = vpow2.f32 %v1251_v44 }
0x1737   :  { %1670 = vpow2.f32 %v1253_v23 }
0x1738   :  { %1672 = vpow2.f32 %v1255_v45 }
0x173b   :  { %v1659_v47 = vpop.eup %1658 }
0x173c   :  { %v1661_v46 = vpop.eup %1660 }
0x173d   :  { %v1257_v43 = vadd.f32 %v1661_v46, %v1659_v47  ;;  %v1663_v48 = vpop.eup %1662 }
0x173e   :  { %v1665_v50 = vpop.eup %1664 }
0x173f   :  { %v1258_v49 = vadd.f32 %v1663_v48, %v1257_v43  ;;  %v1667_v52 = vpop.eup %1666 }
0x1740   :  { %v1669_v54 = vpop.eup %1668 }
0x1741   :  { %v1259_v51 = vadd.f32 %v1665_v50, %v1258_v49  ;;  %v1671_v56 = vpop.eup %1670 }
0x1742   :  { %v1673_v19 = vpop.eup %1672 }
0x1743   :  { %v1260_v53 = vadd.f32 %v1667_v52, %v1259_v51 }
0x1745   :  { %v1261_v55 = vadd.f32 %v1669_v54, %v1260_v53 }
0x1747   :  { %v1262_v57 = vadd.f32 %v1671_v56, %v1261_v55 }
0x1749   :  { %v1263_v58 = vadd.f32 %v1673_v19, %v1262_v57 }
0x174b   :  { %1674 = vlog2.f32 %v1263_v58 }
0x1755   :  { %v1675_v59 = vpop.eup %1674 }
0x1756   :  { %v1265_v60 = vmul.f32 0.6931472, %v1675_v59 }
0x1758   :  { %v1272_v61 = vsub.f32 %v1239_v36, %v1265_v60  ;;  %v1266_v62 = vsub.f32 %v1233_v30, %v1265_v60  ;;  %v1267_v63 = vsub.f32 %v1234_v31, %v1265_v60  ;;  %v1268_v0 = vsub.f32 %v1235_v32, %v1265_v60 }
0x1759   :  { %v1269_v1 = vsub.f32 %v1236_v33, %v1265_v60  ;;  %v1270_v2 = vsub.f32 %v1237_v34, %v1265_v60  ;;  %v1271_v3 = vsub.f32 %v1238_v35, %v1265_v60  ;;  %v1273_v8 = vsub.f32 %v1240_v37, %v1265_v60 }
0x175a   :  { %1280 = vst [vmem:[#allocation12 + $0x30] sm:$0xff] %v1272_v61  ;;  %1274 = vst [vmem:[#allocation12] sm:$0xff] %v1266_v62 }
0x175b   :  { %1275 = vst [vmem:[#allocation12 + $0x8] sm:$0xff] %v1267_v63  ;;  %1276 = vst [vmem:[#allocation12 + $0x10] sm:$0xff] %v1268_v0 }
0x175c   :  { %1277 = vst [vmem:[#allocation12 + $0x18] sm:$0xff] %v1269_v1  ;;  %1278 = vst [vmem:[#allocation12 + $0x20] sm:$0xff] %v1270_v2 }
0x175d   :  { %1279 = vst [vmem:[#allocation12 + $0x28] sm:$0xff] %v1271_v3  ;;  %1281 = vst [vmem:[#allocation12 + $0x38] sm:$0xff] %v1273_v8 }
0x175e   :  { %1775 = shalt.err (!%p1772_p8)
}
0x175f   :  { %s1776_s30 = scalar_lea.hbm %s2112_s6, 1024 }
0x1760   :  { %p1777_p9 = scmp.ne.s32.totalorder %s2112_s6, %s1776_s30  ;;  %p1780_p10 = scmp.lt.u32.totalorder %s1776_s30, %s2112_s6 }
0x1762   :  { %p1782_p11 = pnand %p1780_p10, %p1777_p9 }
0x1764   :  { %1785 = shalt.err (!%p1782_p11)
}
0x1765   :  { %1293 = dma.vmem_to_hbm [thread:$0]  %s1288_s26, 1024, %s2112_s6, [#allocation6], %s1796_s9, %s1796_s9, %s1797_s10  }
0x1766   :  { %1792 = dma.done.wait [#allocation6], 1024  }
0x1767   :  { %1793 = vsyncadd [#allocation6], 4294966272 }
0x1768   :  { %1297 = vsyncpa [#allocation5], 1 }
0x1769   :  { %1298 = vsyncpa [#allocation8], 1 }
0x176a   :  { %1299 = vsyncpa [#allocation11], 1 }
0x176b   :  { %1300 = vsyncpa [#allocation6], 1 }

</bundles_post_ra>
